<compile_context>
chip_gen: v5e
topology: v5e:2x2
jax: 0.10.0
libtpu: 0.0.40
codegen_flags: <defaults>
</compile_context>

<pallas_src>
import functools

import jax
import jax.numpy as jnp
from jax.experimental import pallas as pl
from jax.experimental.pallas import tpu as pltpu


def _round_up(x, m):
    return ((x + m - 1) // m) * m


@functools.lru_cache(maxsize=1)
def _vmem_limit_bytes():
    """Generation-aware scoped-VMEM limit (~85% of physical VMEM).

    v5e/v6e have 128 MiB of VMEM per TensorCore, v7x has 64 MiB; the default
    scoped limit (16-32 MiB) throws most of it away.  Falls back to a value
    that is safe on every generation if the query is unavailable.
    """
    try:
        cap = int(pltpu.get_tpu_info().vmem_capacity_bytes)
    except Exception:  # defensive: API / backend differences
        cap = 0
    if cap <= 0:
        cap = 64 * 1024 * 1024  # assume the smallest (v7x-like) VMEM
    return int(cap * 0.85)


# ---------------------------------------------------------------------------
# Kernel 1: row-wise L2 normalization (the F.normalize(p=2, dim=1) hot path).
# ---------------------------------------------------------------------------
def _l2_normalize_kernel(x_ref, o_ref):
    x = x_ref[...]
    sum_sq = jnp.sum(x * x, axis=-1, keepdims=True)
    # F.normalize(p=2, eps=1e-12): x / max(||x||, eps) == x * rsqrt(max(ss, eps^2))
    o_ref[...] = x * jax.lax.rsqrt(jnp.maximum(sum_sq, 1e-24))


def _l2_normalize_padded(x, d_pad=None, max_tile_rows=2048):
    """Row-wise L2 normalization. Returns a (rows_padded, d_pad) array; the
    caller slices back to the original shape. Zero-padded rows/cols stay zero
    and do not perturb the norms of real rows."""
    n, d = x.shape
    if d_pad is None:
        d_pad = _round_up(d, 128)

    vmem_limit = _vmem_limit_bytes()
    # HBM-bound kernel: big row tiles amortize the ~600-cycle per-step
    # overhead. 4 buffers (in+out, double-buffered) must fit the VMEM limit.
    per_buf = min(8 * 1024 * 1024, vmem_limit // 6)
    budget_rows = max(8, (per_buf // (d_pad * 4)) // 8 * 8)
    tile_rows = min(max_tile_rows, budget_rows, _round_up(n, 8))
    n_pad = _round_up(n, tile_rows)

    x_p = jnp.pad(x, ((0, n_pad - n), (0, d_pad - d)))
    return pl.pallas_call(
        _l2_normalize_kernel,
        out_shape=jax.ShapeDtypeStruct((n_pad, d_pad), x.dtype),
        grid_spec=pltpu.PrefetchScalarGridSpec(
            num_scalar_prefetch=0,
            grid=(n_pad // tile_rows,),
            in_specs=[pl.BlockSpec((tile_rows, d_pad), lambda i: (i, 0))],
            out_specs=pl.BlockSpec((tile_rows, d_pad), lambda i: (i, 0)),
        ),
        compiler_params=pltpu.CompilerParams(
            dimension_semantics=("parallel",),
            vmem_limit_bytes=vmem_limit),
    )(x_p)


def l2_normalize_rows(x):
    """Convenience wrapper that returns the same shape as the input."""
    n, d = x.shape
    return _l2_normalize_padded(x)[:n, :d]


# ---------------------------------------------------------------------------
# Kernel 2a: one-hot selection matmul (small/medium vocab, resident tables).
# ---------------------------------------------------------------------------
def _onehot_energy_kernel(ids_ref, ent_ref, rel_ref, o_ref):
    """Energy tile via a one-hot selection matmul on the (otherwise idle) MXU.

    ids_ref: (tb, 3) int32 columns = (head, tail, relation).
    ent_ref / rel_ref: whole normalized tables, resident in VMEM (single copy).
    """
    tb = o_ref.shape[0]
    n_ent = ent_ref.shape[0]
    n_rel = rel_ref.shape[0]

    h = ids_ref[:, 0:1]  # (tb, 1)
    t = ids_ref[:, 1:2]
    r = ids_ref[:, 2:3]

    ecol = jax.lax.broadcasted_iota(jnp.int32, (tb, n_ent), 1)
    rcol = jax.lax.broadcasted_iota(jnp.int32, (tb, n_rel), 1)
    sel_ent = (ecol == h).astype(jnp.float32) - (ecol == t).astype(jnp.float32)
    sel_rel = (rcol == r).astype(jnp.float32)

    def select(sel, tbl_ref):
        tbl = tbl_ref[...]
        # Split the table into an exactly-bf16-representable part plus a small
        # residual: the selection matrix (0/+-1) is bf16-exact, so the result
        # stays f32-accurate even if the MXU contracts f32 operands via bf16
        # passes.  Cost: one extra (cheap, MXU-idle) matmul per table.
        hi = tbl.astype(jnp.bfloat16).astype(jnp.float32)
        lo = tbl - hi
        return (jnp.dot(sel, hi, preferred_element_type=jnp.float32)
                + jnp.dot(sel, lo, preferred_element_type=jnp.float32))

    acc = select(sel_ent, ent_ref) + select(sel_rel, rel_ref)
    o_ref[...] = acc.astype(o_ref.dtype)


# ---------------------------------------------------------------------------
# Kernel 2b: vectorized gather (larger vocab, still VMEM-resident tables).
# ---------------------------------------------------------------------------
def _gather_energy_kernel(ids_ref, ent_ref, rel_ref, o_ref):
    """Energy tile via vectorized gather from the VMEM-resident tables.

    ids_ref: (3, tb) int32 rows = (head, tail, relation).
    """
    h = ids_ref[0, :]
    t = ids_ref[1, :]
    r = ids_ref[2, :]
    ent = ent_ref[...]
    rel = rel_ref[...]
    heads = jnp.take(ent, h, axis=0, mode="clip")
    tails = jnp.take(ent, t, axis=0, mode="clip")
    rels = jnp.take(rel, r, axis=0, mode="clip")
    o_ref[...] = heads + rels - tails


# ---------------------------------------------------------------------------
# Kernel 2c: DMA gather for tables too large for VMEM residency.
# ---------------------------------------------------------------------------
def _dma_gather_energy_kernel(ids_ref, ent_hbm, rel_hbm, o_ref,
                              hbuf, tbuf, rbuf, sem):
    """Per-row async-copy gather straight from HBM.

    ids_ref lives in SMEM (scalar prefetch); ent_hbm / rel_hbm stay in HBM
    (memory_space=pl.ANY) so only the 2B gathered rows are read from HBM.
    """
    step = pl.program_id(0)
    tb = o_ref.shape[0]
    base = step * tb

    def row_copies(row):
        h = ids_ref[0, base + row]
        t = ids_ref[1, base + row]
        r = ids_ref[2, base + row]
        return (
            pltpu.make_async_copy(ent_hbm.at[pl.ds(h, 1)],
                                  hbuf.at[pl.ds(row, 1)], sem.at[0]),
            pltpu.make_async_copy(ent_hbm.at[pl.ds(t, 1)],
                                  tbuf.at[pl.ds(row, 1)], sem.at[1]),
            pltpu.make_async_copy(rel_hbm.at[pl.ds(r, 1)],
                                  rbuf.at[pl.ds(row, 1)], sem.at[2]),
        )

    # Issue all row DMAs for this tile, then drain them.
    # TODO(synk): bound/overlap outstanding copies with a small lookahead
    # window if per-row DMA latency ever shows up as the bottleneck.
    @pl.loop(0, tb)
    def _issue(row):
        for cp in row_copies(row):
            cp.start()

    # All copies on a given semaphore have identical sizes, so waiting with
    # freshly-built (equivalent) descriptors drains them correctly.
    @pl.loop(0, tb)
    def _drain(row):
        for cp in row_copies(row):
            cp.wait()

    o_ref[...] = hbuf[...] + rbuf[...] - tbuf[...]


# ---------------------------------------------------------------------------
# Energy dispatcher: pick a path from static sizes + detected VMEM capacity.
# ---------------------------------------------------------------------------
def transe_energies(ent_pad, rel_pad, ids, tile_batch=1024, force_path=None):
    """Fused (true + corrupted) gather + energy computation.

    ids: (3, total) int32 rows = (head, tail, relation).  Returns the
    (total_padded, D_pad) energy slab; the caller slices to (total, D).
    """
    total = ids.shape[1]
    n_pad, d_pad = ent_pad.shape
    r_pad = rel_pad.shape[0]
    vmem_limit = _vmem_limit_bytes()

    # Resident tables are single-buffered (whole-array VMEM operands, not
    # pipelined) so they cost exactly their own size; keep headroom for the
    # double-buffered id/output tiles and compiler-internal scratch.
    table_bytes = (n_pad + r_pad) * d_pad * ent_pad.dtype.itemsize
    resident_ok = table_bytes <= vmem_limit - 8 * 1024 * 1024
    if force_path == "dma":
        resident_ok = False

    req = _round_up(total, 8)

    if resident_ok:
        # Prefer the MXU one-hot path while its (tb, n_pad + r_pad) selection
        # matrix stays small; otherwise fall back to the vectorized gather.
        onehot_budget = 4 * 1024 * 1024
        onehot_cap = (onehot_budget // ((n_pad + r_pad) * 4)) // 8 * 8
        use_onehot = onehot_cap >= min(req, 128)
        if force_path == "gather":
            use_onehot = False
        elif force_path == "onehot":
            use_onehot = True

        cap = min(tile_batch, max(onehot_cap, 8)) if use_onehot else tile_batch
        tb = req if req <= cap else max(128, (cap // 128) * 128)
        total_pad = _round_up(total, tb)

        if use_onehot:
            kernel = _onehot_energy_kernel
            ids_p = jnp.pad(ids.astype(jnp.int32).T,
                            ((0, total_pad - total), (0, 0)))
            ids_spec = pl.BlockSpec((tb, 3), lambda i: (i, 0))
        else:
            kernel = _gather_energy_kernel
            ids_p = jnp.pad(ids.astype(jnp.int32),
                            ((0, 0), (0, total_pad - total)))
            ids_spec = pl.BlockSpec((3, tb), lambda i: (0, i))

        return pl.pallas_call(
            kernel,
            out_shape=jax.ShapeDtypeStruct((total_pad, d_pad), ent_pad.dtype),
            grid_spec=pltpu.PrefetchScalarGridSpec(
                num_scalar_prefetch=0,
                grid=(total_pad // tb,),
                in_specs=[
                    ids_spec,
                    # Whole-array VMEM operands: one resident copy each,
                    # no pipeline double-buffering.
                    pl.BlockSpec(memory_space=pltpu.MemorySpace.VMEM),
                    pl.BlockSpec(memory_space=pltpu.MemorySpace.VMEM),
                ],
                out_specs=pl.BlockSpec((tb, d_pad), lambda i: (i, 0)),
            ),
            compiler_params=pltpu.CompilerParams(
                # "arbitrary": do not replicate the resident tables across
                # TensorCores (v7x) for a tiny batch grid.
                dimension_semantics=("arbitrary",),
                vmem_limit_bytes=vmem_limit),
        )(ids_p, ent_pad, rel_pad)

    # ---- Large-table fallback: DMA gather straight from HBM ----------------
    tb = min(256, req)
    total_pad = _round_up(total, tb)
    ids_p = jnp.pad(ids.astype(jnp.int32), ((0, 0), (0, total_pad - total)))
    return pl.pallas_call(
        _dma_gather_energy_kernel,
        out_shape=jax.ShapeDtypeStruct((total_pad, d_pad), ent_pad.dtype),
        grid_spec=pltpu.PrefetchScalarGridSpec(
            num_scalar_prefetch=1,                       # ids land in SMEM
            grid=(total_pad // tb,),
            in_specs=[pl.BlockSpec(memory_space=pl.ANY),    # entity table (HBM)
                      pl.BlockSpec(memory_space=pl.ANY)],   # relation table (HBM)
            out_specs=pl.BlockSpec((tb, d_pad), lambda i, ids_ref: (i, 0)),
            scratch_shapes=[
                pltpu.VMEM((tb, d_pad), ent_pad.dtype),   # gathered heads
                pltpu.VMEM((tb, d_pad), ent_pad.dtype),   # gathered tails
                pltpu.VMEM((tb, d_pad), rel_pad.dtype),   # gathered relations
                pltpu.SemaphoreType.DMA((3,)),
            ],
        ),
        compiler_params=pltpu.CompilerParams(
            dimension_semantics=("parallel",),
            vmem_limit_bytes=vmem_limit),
    )(ids_p, ent_pad, rel_pad)


# ---------------------------------------------------------------------------
# Forward wrapper (mirrors TransE.forward).
# ---------------------------------------------------------------------------
def transe_forward(entity_emb, relation_emb, batch, corrupted_batch):
    n_ent, d = entity_emb.shape
    n_rel = relation_emb.shape[0]
    b = batch.shape[1]
    d_pad = _round_up(d, 128)

    # 1) normalize the entity table (kept as state, like torch's in-place update)
    ent_norm_pad = _l2_normalize_padded(entity_emb, d_pad=d_pad)

    # 2) pad the relation table to the same lane-dense layout
    rel_pad = jnp.pad(
        relation_emb,
        ((0, _round_up(n_rel, 8) - n_rel), (0, d_pad - relation_emb.shape[1])),
    )

    # 3) fuse the true and corrupted batches into one gather+energy kernel
    ids = jnp.concatenate(
        [batch.astype(jnp.int32), corrupted_batch.astype(jnp.int32)], axis=1)
    energies_pad = transe_energies(ent_norm_pad, rel_pad, ids)

    batch_energies = energies_pad[:b, :d]
    corr_batch_energies = energies_pad[b:2 * b, :d]
    ent_norm = ent_norm_pad[:n_ent, :d]
    return batch_energies, corr_batch_energies, ent_norm


# ---------------------------------------------------------------------------
# Pure-JAX reference for correctness checking.
# ---------------------------------------------------------------------------
def _ref_forward(entity_emb, relation_emb, batch, corrupted_batch):
    norm = jnp.sqrt(jnp.sum(entity_emb * entity_emb, axis=1, keepdims=True))
    ent = entity_emb / jnp.maximum(norm, 1e-12)

    def energies(h, t, r):
        return ent[h] + relation_emb[r] - ent[t]

    be = energies(batch[0], batch[1], batch[2])
    ce = energies(corrupted_batch[0], corrupted_batch[1], corrupted_batch[2])
    return be, ce


if __name__ == "__main__":
    # Small synthetic "knowledge graph" sizes.
    num_entities = 32
    num_relations = 8
    num_of_dimension = 32
    batch_size = 8

    key = jax.random.PRNGKey(0)
    k_ent, k_rel, k_b, k_c = jax.random.split(key, 4)

    bound = 6.0 / (num_of_dimension ** 0.5)
    entity_emb = jax.random.uniform(
        k_ent, (num_entities, num_of_dimension),
        minval=-bound, maxval=bound, dtype=jnp.float32)
    relation_emb_raw = jax.random.uniform(
        k_rel, (num_relations, num_of_dimension),
        minval=-bound, maxval=bound, dtype=jnp.float32)
    # __init__ normalizes the relation embeddings once (also via the kernel).
    relation_emb = l2_normalize_rows(relation_emb_raw)

    # batch / corrupted_batch: shape (3, B) = (head_ids, tail_ids, relation_ids)
    kb_h, kb_t, kb_r = jax.random.split(k_b, 3)
    batch = jnp.stack([
        jax.random.randint(kb_h, (batch_size,), 0, num_entities, dtype=jnp.int32),
        jax.random.randint(kb_t, (batch_size,), 0, num_entities, dtype=jnp.int32),
        jax.random.randint(kb_r, (batch_size,), 0, num_relations, dtype=jnp.int32),
    ])
    kc_h, kc_t, kc_r = jax.random.split(k_c, 3)
    corrupted_batch = jnp.stack([
        jax.random.randint(kc_h, (batch_size,), 0, num_entities, dtype=jnp.int32),
        jax.random.randint(kc_t, (batch_size,), 0, num_entities, dtype=jnp.int32),
        jax.random.randint(kc_r, (batch_size,), 0, num_relations, dtype=jnp.int32),
    ])

    fwd = jax.jit(transe_forward)
    batch_energies, corr_batch_energies, ent_norm = fwd(
        entity_emb, relation_emb, batch, corrupted_batch)
    jax.block_until_ready((batch_energies, corr_batch_energies, ent_norm))

    # --- correctness checks against a pure-JAX reference --------------------
    rel_ref_norm = relation_emb_raw / jnp.maximum(
        jnp.sqrt(jnp.sum(relation_emb_raw ** 2, axis=1, keepdims=True)), 1e-12)
    assert jnp.allclose(relation_emb, rel_ref_norm, atol=1e-5, rtol=1e-5)

    ent_ref_norm = entity_emb / jnp.maximum(
        jnp.sqrt(jnp.sum(entity_emb ** 2, axis=1, keepdims=True)), 1e-12)
    assert jnp.allclose(ent_norm, ent_ref_norm, atol=1e-5, rtol=1e-5)

    ref_be, ref_ce = _ref_forward(entity_emb, relation_emb, batch, corrupted_batch)
    assert batch_energies.shape == (batch_size, num_of_dimension)
    assert corr_batch_energies.shape == (batch_size, num_of_dimension)
    # The small-vocab default path runs the selection matmul on the MXU; the
    # hi/lo table split keeps its rounding <= ~1e-5 on every generation.
    assert jnp.allclose(batch_energies, ref_be, atol=1e-4, rtol=1e-4)
    assert jnp.allclose(corr_batch_energies, ref_ce, atol=1e-4, rtol=1e-4)

    # Also exercise the resident-table gather fallback (used when the one-hot
    # selection matrix would be too large for VMEM): it is gather-exact.
    ent_norm_pad = _l2_normalize_padded(entity_emb)
    rel_p = jnp.pad(relation_emb, ((0, 0), (0, 128 - num_of_dimension)))
    ids_all = jnp.concatenate([batch, corrupted_batch], axis=1).astype(jnp.int32)
    e_gather = transe_energies(ent_norm_pad, rel_p, ids_all, force_path="gather")
    e_gather = e_gather[:2 * batch_size, :num_of_dimension]
    assert jnp.allclose(e_gather[:batch_size], ref_be, atol=1e-5, rtol=1e-5)
    assert jnp.allclose(e_gather[batch_size:], ref_ce, atol=1e-5, rtol=1e-5)

    print("KERNEL_OK")
</pallas_src>

<mosaic_0001>
module attributes {stable_mosaic.version = 11 : i64} {
  func.func @_l2_normalize_kernel(%arg0: i32, %arg1: memref<8x128xf32, #tpu.memory_space<vmem>>, %arg2: memref<8x128xf32, #tpu.memory_space<vmem>>) attributes {dimension_semantics = [#tpu.dimension_semantics<parallel>], iteration_bounds = array<i64: 1>, scalar_prefetch = 0 : i64, scratch_operands = 0 : i64, tpu.core_type = #tpu.core_type<tc>, window_params = [{transform_indices = @transform_0, window_bounds = array<i64: 8, 128>}, {transform_indices = @transform_1, window_bounds = array<i64: 8, 128>}]} {
    %c0 = arith.constant 0 : index
    %c0_0 = arith.constant 0 : index
    %0 = vector.load %arg1[%c0, %c0_0] : memref<8x128xf32, #tpu.memory_space<vmem>>, vector<8x128xf32>
    %1 = arith.mulf %0, %0 : vector<8x128xf32>
    %cst = arith.constant dense<0.000000e+00> : vector<8xf32>
    %2 = vector.multi_reduction <add>, %1, %cst [1] : vector<8x128xf32> to vector<8xf32>
    %3 = vector.shape_cast %2 : vector<8xf32> to vector<8x1xf32>
    %cst_1 = arith.constant 1.000000e-24 : f32
    %4 = vector.broadcast %cst_1 : f32 to vector<8x1xf32>
    %5 = arith.maximumf %3, %4 : vector<8x1xf32>
    %6 = math.rsqrt %5 : vector<8x1xf32>
    %7 = vector.broadcast %6 : vector<8x1xf32> to vector<8x128xf32>
    %8 = arith.mulf %0, %7 : vector<8x128xf32>
    %c0_2 = arith.constant 0 : index
    %c0_3 = arith.constant 0 : index
    %9 = vector.load %arg2[%c0_2, %c0_3] : memref<8x128xf32, #tpu.memory_space<vmem>>, vector<8x128xf32>
    tpu.vector_store %arg2[%c0_2, %c0_3], %8 {strides = array<i32>} : memref<8x128xf32, #tpu.memory_space<vmem>>, vector<8x128xf32>,
    return
  }
  func.func @transform_0(%arg0: i32) -> (i32, i32) {
    %c0_i32 = arith.constant 0 : i32
    %c0_i32_0 = arith.constant 0 : i32
    return %arg0, %c0_i32 : i32, i32
  }
  func.func @transform_1(%arg0: i32) -> (i32, i32) {
    %c0_i32 = arith.constant 0 : i32
    %c0_i32_0 = arith.constant 0 : i32
    return %arg0, %c0_i32 : i32, i32
  }
}

</mosaic_0001>

<bundles_post_ra>
// kernel: tpu_custom_call.1
= control target key start
LH: loop header
LB: loop body
LE: loop exit
PB: predicated region body
PF: predicated region fallthrough
CT: control target
= control target key end

     0   :  { %6 = vsyncpa [#allocation3], 0  ;;  %s131_s0 = inlined_call_operand.hbm [shape: f32[8,128], index: 0, kind: input, shape index: {}]   ;;  %s132_s1 = inlined_call_operand.hbm [shape: f32[8,128], index: 1, kind: output, shape index: {}]  }
   0x1   :  { %7 = vsyncpa [#allocation4], 0  ;;  %s13_s8 = sshll.u32 %s131_s0, 4  ;;  %s113_s9 = smov [#allocation2]   ;;  %s14_s8 = int_to_ptr.hbm [resolvable:$true] %s13_s8 }
   0x2   :  { %s15_s10 = sshll.u32 %s113_s9, 4  ;;  %s16_s10 = int_to_ptr.vmem [resolvable:$true] %s15_s10 }
   0x3   :  { %18 = dma.hbm_to_vmem [thread:$0]  %s14_s8, 128, %s16_s10, [#allocation3]  }
   0x4   :  { %109 = dma.done.wait [#allocation3], 128  }
   0x5   :  { %110 = vsyncadd [#allocation3], 4294967168  ;;  %v23_v0 = vld [vmem:[#allocation2] sm:$0xff]  ;;  %s114_s0 = smov [#allocation5]   ;;  %s47_s14 = sshll.u32 %s132_s1, 4  ;;  %s48_s14 = int_to_ptr.hbm [resolvable:$true] %s47_s14 }
   0x6   :  { %v24_v1 = vmul.f32 %v23_v0, %v23_v0  ;;  %s45_s11 = sshll.u32 %s114_s0, 4  ;;  %s46_s11 = int_to_ptr.vmem [resolvable:$true] %s45_s11 }
   0x8   :  { %25 = vadd.xlane.f32.xlu0 %v24_v1 }
  0x7b   :  { %v26_v2 = vpop.xlane.xlu0 %25 }
  0x7c   :  { %v27_v3 = vmax.f32 %v26_v2, 1e-24 }
  0x7e   :  { %59 = vrsqrt.f32 %v27_v3  ;;  %vm34_vm1 = vweird.f32 %v27_v3 }
  0x84   :  { %v60_v4 = vpop.eup %59 }
  0x85   :  { %v29_v5 = vmul.f32 %v60_v4, %v27_v3  ;;  %vm35_vm0 = vweird.f32 %v60_v4 }
  0x86   :  { %vm36_vm2 = vmor %vm34_vm1, %vm35_vm0 }
  0x87   :  { %v30_v6 = vmul.f32 %v60_v4, %v29_v5 }
  0x89   :  { %v31_v7 = vmul.f32 0.5, %v30_v6 }
  0x8b   :  { %v32_v8 = vsub.f32 1.5, %v31_v7 }
  0x8d   :  { %v33_v9 = vmul.f32 %v60_v4, %v32_v8 }
  0x8f   :  { %v37_v10 = vsel %vm36_vm2, %v60_v4, %v33_v9 }
  0x90   :  { %v38_v11 = vmul.f32 %v37_v10, %v23_v0 }
  0x92   :  { %39 = vst [vmem:[#allocation5] sm:$0xff] %v38_v11 }
  0x93   :  { %50 = dma.vmem_to_hbm [thread:$0]  %s46_s11, 128, %s48_s14, [#allocation4]  }
  0x94   :  { %111 = dma.done.wait [#allocation4], 128  }
  0x95   :  { %112 = vsyncadd [#allocation4], 4294967168 }
  0x96   :  { %55 = vsyncpa [#allocation3], 1 }
  0x97   :  { %56 = vsyncpa [#allocation4], 1 }

</bundles_post_ra>
